<compile_context>
chip_gen: v7x
topology: tpu7x:2x2x1
jax: 0.10.0
libtpu: 0.0.40
codegen_flags: <defaults>
</compile_context>

<pallas_src>
import functools
import math

import jax
import jax.numpy as jnp
from jax.experimental import pallas as pl
from jax.experimental.pallas import tpu as pltpu


NEG_INF = -1e30  # finite mask value: avoids inf-inf NaNs in the online softmax


def find_multiple(n: int, k: int) -> int:
    if n % k == 0:
        return n
    return n + k - n % k


# ----------------------------------------------------------------------------
# Kernel A: RMSNorm + fused QKV projection + rotate-half RoPE
# ----------------------------------------------------------------------------
def qkv_rope_kernel(x_ref, cos_ref, sin_ref, wqkv_ref, norm_w_ref,
                    q_ref, k_ref, v_ref, *,
                    n_head: int, n_kv_head: int, head_dim: int, eps: float):
    x = x_ref[0].astype(jnp.float32)                      # (tq, D)
    tq = x.shape[0]
    q_size = n_head * head_dim
    kv_size = n_kv_head * head_dim
    rep = n_head // n_kv_head
    half = head_dim // 2

    # ---- RMSNorm (attention_norm) ----
    ms = jnp.mean(x * x, axis=-1, keepdims=True)
    xn = (x * jax.lax.rsqrt(ms + eps)) * norm_w_ref[0].astype(jnp.float32)

    # ---- fused QKV projection: bf16 operands, f32 MXU accumulation ----
    qkv = jnp.dot(xn.astype(jnp.bfloat16), wqkv_ref[...],
                  preferred_element_type=jnp.float32)     # (tq, q+2kv)

    cos = cos_ref[...]                                    # (tq, hd) = [c | c]
    sin = sin_ref[...]

    def split_heads(t, nh):                               # -> (nh, tq, hd)
        return jnp.transpose(t.reshape(tq, nh, head_dim), (1, 0, 2))

    def rope(th):                                         # th: (nh, tq, hd)
        t_rot = jnp.concatenate([-th[..., half:], th[..., :half]], axis=-1)
        return th * cos[None] + t_rot * sin[None]

    qh = rope(split_heads(qkv[:, :q_size], n_head))                 # (H, tq, hd)
    kh = rope(split_heads(qkv[:, q_size:q_size + kv_size], n_kv_head))
    vh = split_heads(qkv[:, q_size + kv_size:], n_kv_head)          # (Hkv, tq, hd)

    # Pre-scale Q by 1/sqrt(head_dim) once here instead of per KV tile.
    qh = qh * (1.0 / math.sqrt(head_dim))

    # Fold the GQA repeat factor into the query-row axis: (Hkv, tq*rep, hd).
    if rep > 1:
        qh = qh.reshape(n_kv_head, rep, tq, head_dim)
        qh = jnp.transpose(qh, (0, 2, 1, 3)).reshape(n_kv_head, tq * rep, head_dim)

    q_ref[0] = qh.astype(q_ref.dtype)
    k_ref[0] = kh.astype(k_ref.dtype)
    v_ref[0] = vh.astype(v_ref.dtype)


# ----------------------------------------------------------------------------
# Kernel B: flash attention (online softmax over KV tiles) + Wo + residual +
#           RMSNorm + SwiGLU FFN + residual (fused into the last KV step)
# ----------------------------------------------------------------------------
def flash_ffn_kernel(q_ref, k_ref, v_ref, x_ref, wo_ref, ffn_w_ref,
                     w1_ref, w3_ref, w2_ref, o_ref,
                     m_scr, l_scr, acc_scr, *,
                     n_head: int, n_kv_head: int, head_dim: int, eps: float):
    qi = pl.program_id(1)
    kv = pl.program_id(2)
    n_kv_steps = pl.num_programs(2)
    rep = n_head // n_kv_head
    nq = q_ref.shape[2]                   # q_tile * rep
    kv_tile = k_ref.shape[2]
    q_tile = nq // rep

    @pl.when(kv == 0)
    def _init():
        m_scr[...] = jnp.full(m_scr.shape, NEG_INF, jnp.float32)
        l_scr[...] = jnp.zeros(l_scr.shape, jnp.float32)
        acc_scr[...] = jnp.zeros(acc_scr.shape, jnp.float32)

    # Skip KV tiles that lie entirely above the causal diagonal.
    @pl.when(kv * kv_tile <= qi * q_tile + (q_tile - 1))
    def _attend():
        qg = q_ref[0]                     # (Hkv, nq, hd)   bf16, pre-scaled
        kg = k_ref[0]                     # (Hkv, tkv, hd)  bf16
        vg = v_ref[0]                     # (Hkv, tkv, hd)  bf16

        s = jnp.einsum('gnd,gkd->gnk', qg, kg,
                       preferred_element_type=jnp.float32)   # (Hkv, nq, tkv)

        n_idx = jax.lax.broadcasted_iota(jnp.int32, (nq, kv_tile), 0)
        k_idx = jax.lax.broadcasted_iota(jnp.int32, (nq, kv_tile), 1)
        q_pos = qi * q_tile + n_idx // rep
        k_pos = kv * kv_tile + k_idx
        s = jnp.where((k_pos <= q_pos)[None], s, NEG_INF)

        m_prev = m_scr[...]
        m_new = jnp.maximum(m_prev, jnp.max(s, axis=-1, keepdims=True))
        alpha = jnp.exp(m_prev - m_new)
        p = jnp.exp(s - m_new)
        l_scr[...] = alpha * l_scr[...] + jnp.sum(p, axis=-1, keepdims=True)
        acc_scr[...] = alpha * acc_scr[...] + jnp.einsum(
            'gnk,gkd->gnd', p.astype(jnp.bfloat16), vg,
            preferred_element_type=jnp.float32)
        m_scr[...] = m_new

    @pl.when(kv == n_kv_steps - 1)
    def _finalize():
        attn = acc_scr[...] * pl.reciprocal(l_scr[...], approx=True)  # (Hkv,nq,hd)
        # Back to (q_tile, n_head*head_dim), head index = g*rep + r.
        if rep > 1:
            attn = attn.reshape(n_kv_head, q_tile, rep, head_dim)
            attn = jnp.transpose(attn, (1, 0, 2, 3))
        else:
            attn = jnp.transpose(attn, (1, 0, 2))
        attn = attn.reshape(q_tile, n_head * head_dim)

        x = x_ref[0].astype(jnp.float32)
        h = x + jnp.dot(attn.astype(jnp.bfloat16), wo_ref[...],
                        preferred_element_type=jnp.float32)

        # RMSNorm (ffn_norm) + SwiGLU FFN + residual
        ms = jnp.mean(h * h, axis=-1, keepdims=True)
        hn = (h * jax.lax.rsqrt(ms + eps)) * ffn_w_ref[0].astype(jnp.float32)
        hn_b = hn.astype(jnp.bfloat16)
        g1 = jnp.dot(hn_b, w1_ref[...], preferred_element_type=jnp.float32)
        g3 = jnp.dot(hn_b, w3_ref[...], preferred_element_type=jnp.float32)
        act = (jax.nn.silu(g1) * g3).astype(jnp.bfloat16)
        ffn = jnp.dot(act, w2_ref[...], preferred_element_type=jnp.float32)
        o_ref[0] = (h + ffn).astype(o_ref.dtype)


# ----------------------------------------------------------------------------
# Wrapper
# ----------------------------------------------------------------------------
def _half_split_cols(n_heads, head_dim, offset):
    cols = []
    for h in range(n_heads):
        base = offset + h * head_dim
        cols.extend(base + j for j in range(0, head_dim, 2))   # evens -> 1st half
        cols.extend(base + j for j in range(1, head_dim, 2))   # odds  -> 2nd half
    return cols


def transformer_block(x, freqs_cis, params, *, n_head, n_kv_head, head_dim,
                      eps=1e-5, q_tile=None, kv_tile=None):
    B, S, D = x.shape
    assert D == n_head * head_dim
    assert n_head % n_kv_head == 0
    rep = n_head // n_kv_head
    q_size = n_head * head_dim
    kv_size = n_kv_head * head_dim
    total = q_size + 2 * kv_size
    hidden = params['w1_t'].shape[1]

    if q_tile is None:
        q_tile = min(S, 128)
    if kv_tile is None:
        kv_tile = min(S, 128)
    assert S % q_tile == 0 and S % kv_tile == 0
    n_q, n_kv = S // q_tile, S // kv_tile

    # Lane-dense rotate-half RoPE tables: cos/sin of shape (S, head_dim).
    cos_h, sin_h = freqs_cis[..., 0], freqs_cis[..., 1]
    cos_full = jnp.concatenate([cos_h, cos_h], axis=-1).astype(jnp.float32)
    sin_full = jnp.concatenate([sin_h, sin_h], axis=-1).astype(jnp.float32)

    # Permute Wq/Wk output columns into (even | odd) half-split order per head.
    # Applied consistently to Q and K, so q.k dot products (and the block
    # output) are unchanged.
    cols = (_half_split_cols(n_head, head_dim, 0)
            + _half_split_cols(n_kv_head, head_dim, q_size)
            + list(range(q_size + kv_size, total)))
    wqkv_b = params['wqkv_t'][:, jnp.asarray(cols, jnp.int32)].astype(jnp.bfloat16)
    wo_b = params['wo_t'].astype(jnp.bfloat16)
    w1_b = params['w1_t'].astype(jnp.bfloat16)
    w3_b = params['w3_t'].astype(jnp.bfloat16)
    w2_b = params['w2_t'].astype(jnp.bfloat16)
    # TODO(synk): for large D/hidden (e.g. 4096/11008), stream weight K/N tiles
    # (reduction grid axis or pltpu.emit_pipeline) instead of keeping them
    # VMEM-resident, especially on v7x's 64 MiB VMEM.

    # ---- Kernel A ----
    kernel_a = functools.partial(qkv_rope_kernel, n_head=n_head,
                                 n_kv_head=n_kv_head, head_dim=head_dim, eps=eps)
    q, k, v = pl.pallas_call(
        kernel_a,
        out_shape=(
            jax.ShapeDtypeStruct((B, n_kv_head, S * rep, head_dim), jnp.bfloat16),
            jax.ShapeDtypeStruct((B, n_kv_head, S, head_dim), jnp.bfloat16),
            jax.ShapeDtypeStruct((B, n_kv_head, S, head_dim), jnp.bfloat16),
        ),
        grid=(B, n_q),
        in_specs=[
            pl.BlockSpec((1, q_tile, D), lambda b, i: (b, i, 0)),
            pl.BlockSpec((q_tile, head_dim), lambda b, i: (i, 0)),
            pl.BlockSpec((q_tile, head_dim), lambda b, i: (i, 0)),
            pl.BlockSpec((D, total), lambda b, i: (0, 0)),
            pl.BlockSpec((1, D), lambda b, i: (0, 0)),
        ],
        out_specs=(
            pl.BlockSpec((1, n_kv_head, q_tile * rep, head_dim),
                         lambda b, i: (b, 0, i, 0)),
            pl.BlockSpec((1, n_kv_head, q_tile, head_dim),
                         lambda b, i: (b, 0, i, 0)),
            pl.BlockSpec((1, n_kv_head, q_tile, head_dim),
                         lambda b, i: (b, 0, i, 0)),
        ),
        compiler_params=pltpu.CompilerParams(
            dimension_semantics=("parallel", "parallel"),
            vmem_limit_bytes=64 * 1024 * 1024),
        cost_estimate=pl.CostEstimate(
            flops=2 * B * S * D * total,
            transcendentals=B * S,
            bytes_accessed=4 * B * S * D + 2 * B * S * total + 2 * D * total),
    )(x, cos_full, sin_full, wqkv_b, params['attn_norm_w'])

    # ---- Kernel B ----
    kernel_b = functools.partial(flash_ffn_kernel, n_head=n_head,
                                 n_kv_head=n_kv_head, head_dim=head_dim, eps=eps)
    out = pl.pallas_call(
        kernel_b,
        out_shape=jax.ShapeDtypeStruct((B, S, D), x.dtype),
        grid=(B, n_q, n_kv),
        in_specs=[
            pl.BlockSpec((1, n_kv_head, q_tile * rep, head_dim),
                         lambda b, i, j: (b, 0, i, 0)),                   # q
            pl.BlockSpec((1, n_kv_head, kv_tile, head_dim),
                         lambda b, i, j: (b, 0, j, 0)),                   # k
            pl.BlockSpec((1, n_kv_head, kv_tile, head_dim),
                         lambda b, i, j: (b, 0, j, 0)),                   # v
            pl.BlockSpec((1, q_tile, D), lambda b, i, j: (b, i, 0)),      # x
            pl.BlockSpec((D, D), lambda b, i, j: (0, 0)),                 # wo
            pl.BlockSpec((1, D), lambda b, i, j: (0, 0)),                 # ffn norm
            pl.BlockSpec((D, hidden), lambda b, i, j: (0, 0)),            # w1
            pl.BlockSpec((D, hidden), lambda b, i, j: (0, 0)),            # w3
            pl.BlockSpec((hidden, D), lambda b, i, j: (0, 0)),            # w2
        ],
        out_specs=pl.BlockSpec((1, q_tile, D), lambda b, i, j: (b, i, 0)),
        scratch_shapes=[
            pltpu.VMEM((n_kv_head, q_tile * rep, 1), jnp.float32),          # m
            pltpu.VMEM((n_kv_head, q_tile * rep, 1), jnp.float32),          # l
            pltpu.VMEM((n_kv_head, q_tile * rep, head_dim), jnp.float32),   # acc
        ],
        compiler_params=pltpu.CompilerParams(
            dimension_semantics=("parallel", "parallel", "arbitrary"),
            vmem_limit_bytes=64 * 1024 * 1024),
        cost_estimate=pl.CostEstimate(
            flops=B * (4 * S * S * D + 2 * S * D * D + 6 * S * D * hidden),
            transcendentals=B * n_head * S * S + B * S * hidden,
            bytes_accessed=(2 * B * S * (q_size + 2 * kv_size) + 8 * B * S * D
                            + 2 * (D * D + 3 * D * hidden))),
    )(q, k, v, x, wo_b, params['ffn_norm_w'], w1_b, w3_b, w2_b)
    return out


# ----------------------------------------------------------------------------
# Plain-JAX reference (mirrors the PyTorch forward exactly, eval mode, f32)
# ----------------------------------------------------------------------------
def reference_block(x, freqs_cis, params, *, n_head, n_kv_head, head_dim,
                    eps=1e-5):
    B, S, D = x.shape
    kv_size = n_kv_head * head_dim

    def rmsnorm(v, w):
        return v * jax.lax.rsqrt(jnp.mean(v * v, -1, keepdims=True) + eps) * w

    def rope(t):
        nh = t.shape[2]
        th = t.reshape(B, S, nh, head_dim // 2, 2)
        c = freqs_cis[None, :, None, :, 0]
        s = freqs_cis[None, :, None, :, 1]
        out = jnp.stack([th[..., 0] * c - th[..., 1] * s,
                         th[..., 1] * c + th[..., 0] * s], axis=-1)
        return out.reshape(B, S, nh, head_dim)

    xn = rmsnorm(x, params['attn_norm_w'][0])
    qkv = xn @ params['wqkv_t']
    q = rope(qkv[..., :D].reshape(B, S, n_head, head_dim))
    k = rope(qkv[..., D:D + kv_size].reshape(B, S, n_kv_head, head_dim))
    v = qkv[..., D + kv_size:].reshape(B, S, n_kv_head, head_dim)
    rep = n_head // n_kv_head
    k = jnp.repeat(k, rep, axis=2)
    v = jnp.repeat(v, rep, axis=2)
    scores = jnp.einsum('bqhd,bkhd->bhqk', q, k) / math.sqrt(head_dim)
    mask = jnp.tril(jnp.ones((S, S), bool))
    scores = jnp.where(mask[None, None], scores, -jnp.inf)
    p = jax.nn.softmax(scores, axis=-1)
    attn = jnp.einsum('bhqk,bkhd->bqhd', p, v).reshape(B, S, D)
    h = x + attn @ params['wo_t']
    hn = rmsnorm(h, params['ffn_norm_w'][0])
    ffn = (jax.nn.silu(hn @ params['w1_t']) * (hn @ params['w3_t'])) @ params['w2_t']
    return h + ffn


# ----------------------------------------------------------------------------
if __name__ == "__main__":
    # Small config consistent with ModelArgs semantics (n_kv_head defaults to n_head)
    dim = 32
    n_head = 4
    n_kv_head = 4
    head_dim = dim // n_head
    multiple_of = 32
    hidden = find_multiple(int(2 * (4 * dim) / 3), multiple_of)   # 96
    total_kv_dim = (n_head + 2 * n_kv_head) * head_dim            # 96
    B, S = 2, 16
    eps = 1e-5
    init_range = 0.02

    key = jax.random.PRNGKey(0)
    ks = jax.random.split(key, 8)
    x = jax.random.normal(ks[0], (B, S, dim), jnp.float32)

    params = {
        # pre-transposed to (in, out)
        'wqkv_t': init_range * jax.random.normal(ks[1], (dim, total_kv_dim), jnp.float32),
        'wo_t':   init_range * jax.random.normal(ks[2], (dim, dim), jnp.float32),
        'w1_t':   init_range * jax.random.normal(ks[3], (dim, hidden), jnp.float32),
        'w3_t':   init_range * jax.random.normal(ks[4], (dim, hidden), jnp.float32),
        'w2_t':   init_range * jax.random.normal(ks[5], (hidden, dim), jnp.float32),
        'attn_norm_w': jnp.ones((1, dim), jnp.float32),
        'ffn_norm_w':  jnp.ones((1, dim), jnp.float32),
    }

    # RoPE tables: (S, head_dim//2, 2) with [...,0]=cos, [...,1]=sin
    rope_base = 10000.0
    inv_freq = 1.0 / (rope_base ** (jnp.arange(0, head_dim, 2, jnp.float32) / head_dim))
    t = jnp.arange(S, dtype=jnp.float32)
    ang = jnp.outer(t, inv_freq)                                  # (S, hd//2)
    freqs_cis = jnp.stack([jnp.cos(ang), jnp.sin(ang)], axis=-1)  # (S, hd//2, 2)

    out = transformer_block(x, freqs_cis, params,
                            n_head=n_head, n_kv_head=n_kv_head,
                            head_dim=head_dim, eps=eps, q_tile=8, kv_tile=8)
    out = jax.block_until_ready(out)

    ref = reference_block(x, freqs_cis, params,
                          n_head=n_head, n_kv_head=n_kv_head,
                          head_dim=head_dim, eps=eps)
    assert out.shape == (B, S, dim)
    err = jnp.max(jnp.abs(out - ref))
    # bf16 MXU operands with f32 accumulation -> looser tolerance vs f32 ref
    assert jnp.allclose(out, ref, atol=2e-2, rtol=2e-2), f"max err {err}"

    # TODO(synk): dropout / drop_path are identity (eval mode); kv_cache path not implemented.
    print("KERNEL_OK")
</pallas_src>

<mosaic_0001>
module attributes {stable_mosaic.version = 11 : i64} {
  func.func @qkv_rope_kernel(%arg0: i32, %arg1: i32, %arg2: memref<1x8x32xf32, #tpu.memory_space<vmem>>, %arg3: memref<8x8xf32, #tpu.memory_space<vmem>>, %arg4: memref<8x8xf32, #tpu.memory_space<vmem>>, %arg5: memref<32x96xbf16, #tpu.memory_space<vmem>>, %arg6: memref<1x32xf32, #tpu.memory_space<vmem>>, %arg7: memref<1x4x8x8xbf16, #tpu.memory_space<vmem>>, %arg8: memref<1x4x8x8xbf16, #tpu.memory_space<vmem>>, %arg9: memref<1x4x8x8xbf16, #tpu.memory_space<vmem>>) attributes {dimension_semantics = [#tpu.dimension_semantics<parallel>, #tpu.dimension_semantics<parallel>], iteration_bounds = array<i64: 2, 2>, scalar_prefetch = 0 : i64, scratch_operands = 0 : i64, tpu.core_type = #tpu.core_type<tc>, window_params = [{transform_indices = @transform_0, window_bounds = array<i64: 1, 8, 32>}, {transform_indices = @transform_1, window_bounds = array<i64: 8, 8>}, {transform_indices = @transform_2, window_bounds = array<i64: 8, 8>}, {pipeline_mode = #tpu.pipeline_mode<synchronous>, transform_indices = @transform_3, window_bounds = array<i64: 32, 96>}, {pipeline_mode = #tpu.pipeline_mode<synchronous>, transform_indices = @transform_4, window_bounds = array<i64: 1, 32>}, {transform_indices = @transform_5, window_bounds = array<i64: 1, 4, 8, 8>}, {transform_indices = @transform_6, window_bounds = array<i64: 1, 4, 8, 8>}, {transform_indices = @transform_7, window_bounds = array<i64: 1, 4, 8, 8>}]} {
    %c0 = arith.constant 0 : index
    %c0_0 = arith.constant 0 : index
    %c0_1 = arith.constant 0 : index
    %0 = vector.load %arg2[%c0, %c0_0, %c0_1] : memref<1x8x32xf32, #tpu.memory_space<vmem>>, vector<1x8x32xf32>
    %1 = vector.shape_cast %0 : vector<1x8x32xf32> to vector<8x32xf32>
    %2 = arith.mulf %1, %1 : vector<8x32xf32>
    %cst = arith.constant dense<0.000000e+00> : vector<8xf32>
    %3 = vector.multi_reduction <add>, %2, %cst [1] : vector<8x32xf32> to vector<8xf32>
    %4 = vector.shape_cast %3 : vector<8xf32> to vector<8x1xf32>
    %cst_2 = arith.constant 3.200000e+01 : f32
    %5 = vector.broadcast %cst_2 : f32 to vector<8x1xf32>
    %6 = arith.divf %4, %5 : vector<8x1xf32>
    %cst_3 = arith.constant 9.99999974E-6 : f32
    %7 = vector.broadcast %cst_3 : f32 to vector<8x1xf32>
    %8 = arith.addf %6, %7 : vector<8x1xf32>
    %9 = math.rsqrt %8 : vector<8x1xf32>
    %10 = vector.broadcast %9 : vector<8x1xf32> to vector<8x32xf32>
    %11 = arith.mulf %1, %10 : vector<8x32xf32>
    %c0_4 = arith.constant 0 : index
    %c0_5 = arith.constant 0 : index
    %12 = vector.load %arg6[%c0_4, %c0_5] : memref<1x32xf32, #tpu.memory_space<vmem>>, vector<1x32xf32>
    %13 = vector.shape_cast %12 : vector<1x32xf32> to vector<32xf32>
    %14 = vector.shape_cast %13 : vector<32xf32> to vector<1x32xf32>
    %15 = vector.broadcast %14 : vector<1x32xf32> to vector<8x32xf32>
    %16 = arith.mulf %11, %15 : vector<8x32xf32>
    %17 = arith.truncf %16 : vector<8x32xf32> to vector<8x32xbf16>
    %c0_6 = arith.constant 0 : index
    %c0_7 = arith.constant 0 : index
    %18 = vector.load %arg5[%c0_6, %c0_7] : memref<32x96xbf16, #tpu.memory_space<vmem>>, vector<32x96xbf16>
    %cst_8 = arith.constant dense<0.000000e+00> : vector<8x96xf32>
    %19 = tpu.matmul %17, %18, %cst_8 {dimension_numbers = #tpu.dot_dimension_numbers<[1], [0], [0], [1], [0, 0, 1, 1], [], []>} : vector<8x32xbf16>, vector<32x96xbf16>, vector<8x96xf32> -> vector<8x96xf32>
    %c0_9 = arith.constant 0 : index
    %c0_10 = arith.constant 0 : index
    %20 = vector.load %arg3[%c0_9, %c0_10] : memref<8x8xf32, #tpu.memory_space<vmem>>, vector<8x8xf32>
    %c0_11 = arith.constant 0 : index
    %c0_12 = arith.constant 0 : index
    %21 = vector.load %arg4[%c0_11, %c0_12] : memref<8x8xf32, #tpu.memory_space<vmem>>, vector<8x8xf32>
    %22 = vector.extract_strided_slice %19 {offsets = [0, 0], sizes = [8, 32], strides = [1, 1]} : vector<8x96xf32> to vector<8x32xf32>
    %23 = vector.shape_cast %22 : vector<8x32xf32> to vector<8x4x8xf32>
    %24 = tpu.transpose %23, [1, 0, 2] : vector<8x4x8xf32> -> vector<4x8x8xf32>
    %25 = vector.extract_strided_slice %24 {offsets = [0, 0, 4], sizes = [4, 8, 4], strides = [1, 1, 1]} : vector<4x8x8xf32> to vector<4x8x4xf32>
    %cst_13 = arith.constant 0.000000e+00 : f32
    %26 = vector.broadcast %cst_13 : f32 to vector<4x8x4xf32>
    %27 = arith.subf %26, %25 : vector<4x8x4xf32>
    %28 = vector.extract_strided_slice %24 {offsets = [0, 0, 0], sizes = [4, 8, 4], strides = [1, 1, 1]} : vector<4x8x8xf32> to vector<4x8x4xf32>
    %29 = tpu.concatenate %27, %28 in 2 : vector<4x8x4xf32>, vector<4x8x4xf32> -> vector<4x8x8xf32>
    %30 = vector.shape_cast %20 : vector<8x8xf32> to vector<1x8x8xf32>
    %31 = vector.broadcast %30 : vector<1x8x8xf32> to vector<4x8x8xf32>
    %32 = arith.mulf %24, %31 : vector<4x8x8xf32>
    %33 = vector.shape_cast %21 : vector<8x8xf32> to vector<1x8x8xf32>
    %34 = vector.broadcast %33 : vector<1x8x8xf32> to vector<4x8x8xf32>
    %35 = arith.mulf %29, %34 : vector<4x8x8xf32>
    %36 = arith.addf %32, %35 : vector<4x8x8xf32>
    %37 = vector.extract_strided_slice %19 {offsets = [0, 32], sizes = [8, 32], strides = [1, 1]} : vector<8x96xf32> to vector<8x32xf32>
    %38 = vector.shape_cast %37 : vector<8x32xf32> to vector<8x4x8xf32>
    %39 = tpu.transpose %38, [1, 0, 2] : vector<8x4x8xf32> -> vector<4x8x8xf32>
    %40 = vector.extract_strided_slice %39 {offsets = [0, 0, 4], sizes = [4, 8, 4], strides = [1, 1, 1]} : vector<4x8x8xf32> to vector<4x8x4xf32>
    %cst_14 = arith.constant 0.000000e+00 : f32
    %41 = vector.broadcast %cst_14 : f32 to vector<4x8x4xf32>
    %42 = arith.subf %41, %40 : vector<4x8x4xf32>
    %43 = vector.extract_strided_slice %39 {offsets = [0, 0, 0], sizes = [4, 8, 4], strides = [1, 1, 1]} : vector<4x8x8xf32> to vector<4x8x4xf32>
    %44 = tpu.concatenate %42, %43 in 2 : vector<4x8x4xf32>, vector<4x8x4xf32> -> vector<4x8x8xf32>
    %45 = vector.shape_cast %20 : vector<8x8xf32> to vector<1x8x8xf32>
    %46 = vector.broadcast %45 : vector<1x8x8xf32> to vector<4x8x8xf32>
    %47 = arith.mulf %39, %46 : vector<4x8x8xf32>
    %48 = vector.shape_cast %21 : vector<8x8xf32> to vector<1x8x8xf32>
    %49 = vector.broadcast %48 : vector<1x8x8xf32> to vector<4x8x8xf32>
    %50 = arith.mulf %44, %49 : vector<4x8x8xf32>
    %51 = arith.addf %47, %50 : vector<4x8x8xf32>
    %52 = vector.extract_strided_slice %19 {offsets = [0, 64], sizes = [8, 32], strides = [1, 1]} : vector<8x96xf32> to vector<8x32xf32>
    %53 = vector.shape_cast %52 : vector<8x32xf32> to vector<8x4x8xf32>
    %54 = tpu.transpose %53, [1, 0, 2] : vector<8x4x8xf32> -> vector<4x8x8xf32>
    %cst_15 = arith.constant 0.353553385 : f32
    %55 = vector.broadcast %cst_15 : f32 to vector<4x8x8xf32>
    %56 = arith.mulf %36, %55 : vector<4x8x8xf32>
    %57 = arith.truncf %56 : vector<4x8x8xf32> to vector<4x8x8xbf16>
    %c0_16 = arith.constant 0 : index
    %c0_17 = arith.constant 0 : index
    %c0_18 = arith.constant 0 : index
    %c0_19 = arith.constant 0 : index
    %58 = vector.load %arg7[%c0_16, %c0_17, %c0_18, %c0_19] : memref<1x4x8x8xbf16, #tpu.memory_space<vmem>>, vector<1x4x8x8xbf16>
    %59 = vector.shape_cast %58 : vector<1x4x8x8xbf16> to vector<4x8x8xbf16>
    %60 = vector.shape_cast %57 : vector<4x8x8xbf16> to vector<1x4x8x8xbf16>
    tpu.vector_store %arg7[%c0_16, %c0_17, %c0_18, %c0_19], %60 {strides = array<i32>} : memref<1x4x8x8xbf16, #tpu.memory_space<vmem>>, vector<1x4x8x8xbf16>,
    %61 = arith.truncf %51 : vector<4x8x8xf32> to vector<4x8x8xbf16>
    %c0_20 = arith.constant 0 : index
    %c0_21 = arith.constant 0 : index
    %c0_22 = arith.constant 0 : index
    %c0_23 = arith.constant 0 : index
    %62 = vector.load %arg8[%c0_20, %c0_21, %c0_22, %c0_23] : memref<1x4x8x8xbf16, #tpu.memory_space<vmem>>, vector<1x4x8x8xbf16>
    %63 = vector.shape_cast %62 : vector<1x4x8x8xbf16> to vector<4x8x8xbf16>
    %64 = vector.shape_cast %61 : vector<4x8x8xbf16> to vector<1x4x8x8xbf16>
    tpu.vector_store %arg8[%c0_20, %c0_21, %c0_22, %c0_23], %64 {strides = array<i32>} : memref<1x4x8x8xbf16, #tpu.memory_space<vmem>>, vector<1x4x8x8xbf16>,
    %65 = arith.truncf %54 : vector<4x8x8xf32> to vector<4x8x8xbf16>
    %c0_24 = arith.constant 0 : index
    %c0_25 = arith.constant 0 : index
    %c0_26 = arith.constant 0 : index
    %c0_27 = arith.constant 0 : index
    %66 = vector.load %arg9[%c0_24, %c0_25, %c0_26, %c0_27] : memref<1x4x8x8xbf16, #tpu.memory_space<vmem>>, vector<1x4x8x8xbf16>
    %67 = vector.shape_cast %66 : vector<1x4x8x8xbf16> to vector<4x8x8xbf16>
    %68 = vector.shape_cast %65 : vector<4x8x8xbf16> to vector<1x4x8x8xbf16>
    tpu.vector_store %arg9[%c0_24, %c0_25, %c0_26, %c0_27], %68 {strides = array<i32>} : memref<1x4x8x8xbf16, #tpu.memory_space<vmem>>, vector<1x4x8x8xbf16>,
    return
  }
  func.func @transform_0(%arg0: i32, %arg1: i32) -> (i32, i32, i32) {
    %c0_i32 = arith.constant 0 : i32
    %c0_i32_0 = arith.constant 0 : i32
    return %arg0, %arg1, %c0_i32 : i32, i32, i32
  }
  func.func @transform_1(%arg0: i32, %arg1: i32) -> (i32, i32) {
    %c0_i32 = arith.constant 0 : i32
    %c0_i32_0 = arith.constant 0 : i32
    return %arg1, %c0_i32 : i32, i32
  }
  func.func @transform_2(%arg0: i32, %arg1: i32) -> (i32, i32) {
    %c0_i32 = arith.constant 0 : i32
    %c0_i32_0 = arith.constant 0 : i32
    return %arg1, %c0_i32 : i32, i32
  }
  func.func @transform_3(%arg0: i32, %arg1: i32) -> (i32, i32) {
    %c0_i32 = arith.constant 0 : i32
    %c0_i32_0 = arith.constant 0 : i32
    %c0_i32_1 = arith.constant 0 : i32
    return %c0_i32, %c0_i32_0 : i32, i32
  }
  func.func @transform_4(%arg0: i32, %arg1: i32) -> (i32, i32) {
    %c0_i32 = arith.constant 0 : i32
    %c0_i32_0 = arith.constant 0 : i32
    %c0_i32_1 = arith.constant 0 : i32
    return %c0_i32, %c0_i32_0 : i32, i32
  }
  func.func @transform_5(%arg0: i32, %arg1: i32) -> (i32, i32, i32, i32) {
    %c0_i32 = arith.constant 0 : i32
    %c0_i32_0 = arith.constant 0 : i32
    %c0_i32_1 = arith.constant 0 : i32
    return %arg0, %c0_i32, %arg1, %c0_i32_0 : i32, i32, i32, i32
  }
  func.func @transform_6(%arg0: i32, %arg1: i32) -> (i32, i32, i32, i32) {
    %c0_i32 = arith.constant 0 : i32
    %c0_i32_0 = arith.constant 0 : i32
    %c0_i32_1 = arith.constant 0 : i32
    return %arg0, %c0_i32, %arg1, %c0_i32_0 : i32, i32, i32, i32
  }
  func.func @transform_7(%arg0: i32, %arg1: i32) -> (i32, i32, i32, i32) {
    %c0_i32 = arith.constant 0 : i32
    %c0_i32_0 = arith.constant 0 : i32
    %c0_i32_1 = arith.constant 0 : i32
    return %arg0, %c0_i32, %arg1, %c0_i32_0 : i32, i32, i32, i32
  }
}

</mosaic_0001>

<bundles_post_ra>
// kernel: tpu_custom_call.1
= control target key start
LH: loop header
LB: loop body
LE: loop exit
PB: predicated region body
PF: predicated region fallthrough
CT: control target
= control target key end

     0   :  { %s2649_s0 = inlined_call_operand.hbm [shape: f32[2,16,32], index: 0, kind: input, shape index: {}]   ;;  %s2650_s1 = inlined_call_operand.hbm [shape: f32[16,8], index: 1, kind: input, shape index: {}]   ;;  %s2651_s2 = inlined_call_operand.hbm [shape: f32[16,8], index: 2, kind: input, shape index: {}]   ;;  %s2652_s3 = inlined_call_operand.hbm [shape: bf16[32,96], index: 3, kind: input, shape index: {}]   ;;  %s2653_s4 = inlined_call_operand.hbm [shape: f32[1,32], index: 4, kind: input, shape index: {}]   ;;  %s2654_s5 = inlined_call_operand.hbm [shape: bf16[2,4,16,8], index: 5, kind: output, shape index: {0}]   ;;  %s2655_s6 = inlined_call_operand.hbm [shape: bf16[2,4,16,8], index: 6, kind: output, shape index: {1}]   ;;  %s2656_s7 = inlined_call_operand.hbm [shape: bf16[2,4,16,8], index: 7, kind: output, shape index: {2}]  }
   0x1   :  { %2681 = sst [smem:[#allocation28_spill]] %s2650_s1 }
   0x2   :  { %2682 = sst [smem:[#allocation29_spill]] %s2652_s3 }
   0x3   :  { %2683 = sst [smem:[#allocation30_spill]] %s2653_s4 }
   0x4   :  { %2684 = sst [smem:[#allocation31_spill]] %s2654_s5 }
   0x5   :  { %2685 = sst [smem:[#allocation32_spill]] %s2655_s6 }
   0x6   :  { %2686 = sst [smem:[#allocation33_spill]] %s2656_s7 }
   0x7   :  { %13 = vsyncpa [#allocation3], 0 }
   0x8   :  { %15 = vsyncpa [#allocation3 + $0x1], 0 }
   0x9   :  { %16 = vsyncpa [#allocation6], 0 }
   0xa   :  { %18 = vsyncpa [#allocation6 + $0x1], 0 }
   0xb   :  { %19 = vsyncpa [#allocation9], 0 }
   0xc   :  { %20 = vsyncpa [#allocation4], 0 }
   0xd   :  { %22 = vsyncpa [#allocation4 + $0x1], 0 }
   0xe   :  { %23 = vsyncpa [#allocation13], 0 }
   0xf   :  { %25 = vsyncpa [#allocation13 + $0x1], 0  ;;  %s1979_s24 = smov 0   ;;  %s1981_s25 = smov 0  }
  0x10   :  { %s1983_s26 = smov 0   ;;  %s1985_s27 = smov 0  }
  0x11   :  { %s1987_s28 = smov 0   ;;  %s1989_s29 = smov 0  }
  0x12   :  { %s1991_s30 = smov 0   ;;  %s1993_s8 = smov 0  }
  0x13   :  { %s1995_s9 = smov 0   ;;  %s1997_s10 = smov 0  }
  0x14   :  { %s1999_s11 = smov 0  }
  0x15 LB: > { %2687 = sst [smem:[#allocation20_spill]] %s1883_s26  ;;  %s2035_s12 = sadd.s32 4294967295, %s1915_s11   ;;  %s1915_s11 = sphi %s1999_s11, %s31_s11   ;;  %s1911_s10 = sphi %s1997_s10, %s2750_s10   ;;  %s1907_s9 = sphi %s1995_s9, %s2749_s9   ;;  %s1903_s8 = sphi %s1993_s8, %s2748_s8   ;;  %s1899_s30 = sphi %s1991_s30, %s2747_s30   ;;  %s1895_s29 = sphi %s1989_s29, %s2746_s29   ;;  %s1891_s28 = sphi %s1987_s28, %s2745_s28   ;;  %s1887_s27 = sphi %s1985_s27, %s2744_s27   ;;  %s1883_s26 = sphi %s1983_s26, %s2743_s26   ;;  %s1879_s25 = sphi %s1981_s25, %s2742_s25   ;;  %s1875_s24 = sphi %s1979_s24, %s2741_s24  }
  0x16   : > { %2688 = sst [smem:[#allocation21_spill]] %s1887_s27  ;;  %p1366_p0 = scmp.ge.s32.totalorder %s1915_s11, 1 }
  0x17   : > { %2689 = sst [smem:[#allocation22_spill]] %s1899_s30  ;;  %p2657_p1 = scmp.eq.s32.totalorder %s2035_s12, 0 }
  0x18   : > { %2690 = sst [smem:[#allocation23_spill]] %s1903_s8  ;;  %p254_p2 = scmp.lt.s32.totalorder %s1915_s11, 5 }
  0x19   : > { %s1917_s14 = smov [#allocation8]   ;;  %s2693_s3 = sld [smem:[#allocation29_spill]] }
  0x1a   : > { %p2040_p3 = pnand %p1366_p0, %p254_p2  ;;  %s266_s15 = sshll.u32 %s1917_s14, 4  ;;  %s267_s15 = int_to_ptr.vmem [resolvable:$true] %s266_s15 }
  0x1c   : > { %s2691_s13 = scalar_select %p2040_p3, 1, 0 }
  0x1d   : > { %p1438_p4 = pneg %p2040_p3 }
  0x1f   : > { %p2048_p5 = pnand %p1438_p4, %p2657_p1  ;;  %s1579_s19 = scalar_lea.hbm %s2693_s3, 256 }
  0x20   : > { %p1580_p6 = scmp.ne.s32.totalorder %s2693_s3, %s1579_s19  ;;  %p1586_p10 = scmp.lt.u32.totalorder %s1579_s19, %s2693_s3 }
  0x21   : > { %p2666_p7 = pneg %p2048_p5 }
  0x23   : > { %p1582_p8 = pnand %p2666_p7, %p1580_p6 }
  0x25   : > { %p1583_p9 = pneg %p1582_p8 }
  0x27   : > { %p1588_p11 = pnand %p1586_p10, %p1583_p9 }
  0x29   : > { %1591 = shalt.err (!%p1588_p11)
}
  0x2a   : > { %s1592_s14 = scalar_lea.vmem %s267_s15, 256  ;;  %p1600_p2 = scmp.lt.s32.totalorder %s267_s15, %s267_s15 }
  0x2b   : > { %p1593_p12 = scmp.ne.s32.totalorder %s267_s15, %s1592_s14  ;;  %p1601_p4 = scmp.lt.s32.totalorder %s1592_s14, %s1592_s14 }
  0x2d   : > { %p1595_p13 = pnand %p1593_p12, %p2666_p7  ;;  %p1602_p1 = por %p1601_p4, %p1600_p2 }
  0x2f   : > { %p1596_p0 = pneg %p1595_p13 }
  0x31   : > { %p1603_p3 = pnand %p1602_p1, %p1596_p0 }
  0x33   : > { %1606 = shalt.err (!%p1603_p3)
}
  0x34   : > { %s1918_s17 = smov 64   ;;  %s1919_s18 = smov 4  }
  0x35   : > { %1441 = dma.hbm_to_vmem [thread:$0]  (!%p2048_p5), %s2693_s3, 256, %s267_s15, [#allocation9], %s1918_s17, %s1918_s17, %s1919_s18  }
  0x36   : > { %s40_s21 = sadd.s32 1, %s1907_s9  ;;  %p2665_p3 = scmp.eq.s32.totalorder %s1915_s11, 0 }
  0x37   : > { %p2075_p1 = scmp.ge.s32.totalorder %s40_s21, 2  ;;  %s78_s23 = sadd.s32 1, %s1883_s26 }
  0x38   : > { %p85_p6 = scmp.ne.s32.totalorder %s1883_s26, %s1879_s25  ;;  %p91_p9 = scmp.ne.s32.totalorder %s1879_s25, %s1875_s24 }
  0x39   : > { %s2694_s22 = scalar_select %p2075_p1, 1, 0 }
  0x3a   : > { %s2752_s21 = smov (%p2075_p1, %s40_s21), 0  ;;  %p2089_p8 = por %p85_p6, %p2665_p3 }
  0x3b   : > { %2695 = sst [smem:[#allocation24_spill]] %s2752_s21  ;;  %s2097_s15 = ssub.s32 %s1907_s9, %s2752_s21 }
  0x3c   : > { %p2664_p10 = scmp.lt.s32.totalorder %s1915_s11, 4  ;;  %p76_p11 = scmp.eq.s32.totalorder %s2097_s15, 0 }
  0x3d   : > { %p2697_p12 = scmp.eq.s32.totalorder %s2035_s12, 0  ;;  %s311_s18 = sand.u32 1, %s1915_s11  }
  0x3e   : > { %s313_s19 = sand.u32 1, %s1883_s26   ;;  %s2663_s7 = sshll.u32 %s1907_s9, 7 }
  0x3f   : > { %p2103_p13 = por %p91_p9, %p2697_p12  ;;  %s2112_s3 = sshll.u32 %s313_s19, 3 }
  0x40   : > { %s2110_s20 = scalar_select %p76_p11, %s1883_s26, %s78_s23  }
  0x41   : > { %s2698_s17 = scalar_select %p2103_p13, 1, 0 }
  0x42   : > { %2699 = sst [smem:[#allocation25_spill]] %s2110_s20  ;;  %s315_s5 = scalar_lea.vmem [#allocation5], %s2112_s3 }
  0x43   : > { %s2700_s1 = sld [smem:[#allocation28_spill]]  ;;  %s322_s30 = sshll.u32 %s315_s5, 4  ;;  %s2123_s30 = int_to_ptr.vmem [resolvable:$true] %s322_s30 }
  0x44   : > { %p2129_p0 = pnand %p2664_p10, %p2089_p8  ;;  %s2133_s19 = scalar_lea.sflag [#allocation6], %s311_s18 }
  0x46   : > { %s2701_s23 = scalar_select %p2129_p0, 1, 0 }
  0x47   : > { %p2670_p4 = pneg %p2129_p0 }
  0x49   : > { %s2120_s6 = scalar_lea.hbm %s2700_s1, %s2663_s7  ;;  %s1612_s14 = scalar_lea.hbm %s2700_s1, 256 }
  0x4a   : > { %s1607_s21 = scalar_lea.hbm %s2120_s6, 128  ;;  %p1613_p8 = scmp.lt.u32.totalorder %s2120_s6, %s2700_s1 }
  0x4b   : > { %p1608_p2 = scmp.ne.s32.totalorder %s2120_s6, %s1607_s21  ;;  %p1614_p11 = scmp.lt.u32.totalorder %s1612_s14, %s1607_s21 }
  0x4c   : > { %p1616_p10 = scmp.lt.u32.totalorder %s1607_s21, %s2120_s6 }
  0x4d   : > { %p1610_p6 = pnand %p2670_p4, %p1608_p2  ;;  %p1615_p12 = por %p1614_p11, %p1613_p8 }
  0x4f   : > { %p1611_p9 = pneg %p1610_p6  ;;  %p1617_p3 = por %p1616_p10, %p1615_p12 }
  0x51   : > { %p1618_p7 = pnand %p1617_p3, %p1611_p9 }
  0x53   : > { %1621 = shalt.err (!%p1618_p7)
}
  0x54   : > { %s1622_s18 = scalar_lea.vmem %s2123_s30, 128  ;;  %s1920_s5 = smov [#allocation5]  }
  0x55   : > { %p1623_p2 = scmp.ne.s32.totalorder %s2123_s30, %s1622_s18  ;;  %s1627_s24 = sshll.u32 %s1920_s5, 4  ;;  %s1628_s24 = int_to_ptr.vmem [resolvable:$false] %s1627_s24 }
  0x56   : > { %s1629_s7 = scalar_lea.vmem %s1628_s24, 256  ;;  %p1630_p1 = scmp.lt.s32.totalorder %s2123_s30, %s1628_s24 }
  0x57   : > { %p1625_p6 = pnand %p1623_p2, %p2670_p4  ;;  %p1631_p8 = scmp.lt.s32.totalorder %s1629_s7, %s1622_s18 }
  0x59   : > { %p1626_p13 = pneg %p1625_p6  ;;  %p1632_p11 = por %p1631_p8, %p1630_p1 }
  0x5b   : > { %p1633_p10 = pnand %p1632_p11, %p1626_p13 }
  0x5d   : > { %1636 = shalt.err (!%p1633_p10)
}
  0x5e   : > { %1451 = dma.hbm_to_vmem [thread:$0]  (!%p2129_p0), %s2120_s6, 128, %s2123_s30, %s2133_s19  }
  0x5f   : > { %s1921_s20 = smov [#allocation10]   ;;  %s2702_s4 = sld [smem:[#allocation30_spill]] }
  0x60   : > { %s280_s21 = sshll.u32 %s1921_s20, 4  ;;  %p2703_p1 = pneg %p2048_p5  ;;  %s281_s21 = int_to_ptr.vmem [resolvable:$true] %s280_s21 }
  0x65   : > { %s1637_s5 = scalar_lea.hbm %s2702_s4, 16 }
  0x66   : > { %p1638_p7 = scmp.ne.s32.totalorder %s2702_s4, %s1637_s5  ;;  %p1644_p9 = scmp.lt.u32.totalorder %s1637_s5, %s2702_s4 }
  0x68   : > { %p1640_p3 = pnand %p1638_p7, %p2703_p1 }
  0x6a   : > { %p1641_p13 = pneg %p1640_p3 }
  0x6c   : > { %p1646_p12 = pnand %p1644_p9, %p1641_p13 }
  0x6e   : > { %1649 = shalt.err (!%p1646_p12)
}
  0x6f   : > { %s1650_s6 = scalar_lea.vmem %s281_s21, 16  ;;  %p2704_p6 = pmov %p2703_p1 }
  0x70   : > { %p1651_p2 = scmp.ne.s32.totalorder %s281_s21, %s1650_s6  ;;  %s1657_s1 = scalar_lea.vmem %s281_s21, 32 }
  0x71   : > { %p1658_p10 = scmp.lt.s32.totalorder %s281_s21, %s281_s21  ;;  %p1659_p4 = scmp.lt.s32.totalorder %s1657_s1, %s1650_s6 }
  0x72   : > { %p1653_p8 = pnand %p1651_p2, %p2704_p6 }
  0x73   : > { %p1660_p0 = por %p1659_p4, %p1658_p10 }
  0x74   : > { %p1654_p11 = pneg %p1653_p8 }
  0x76   : > { %p1661_p1 = pnand %p1660_p0, %p1654_p11 }
  0x78   : > { %1664 = shalt.err (!%p1661_p1)
}
  0x79   : > { %1444 = dma.hbm_to_vmem [thread:$0]  (!%p2048_p5), %s2702_s4, 16, %s281_s21, [#allocation9]  }
  0x7a   : > { %s2677_s16 = sadd.s32 4294967294, %s1915_s11   ;;  %s43_s20 = sadd.s32 1, %s1911_s10 }
  0x7b   : > { %p2705_p0 = scmp.ne.s32.totalorder %s2694_s22, 0  ;;  %s52_s14 = sadd.s32 1, %s1895_s29 }
  0x7c   : > { %p59_p4 = scmp.ne.s32.totalorder %s1895_s29, %s1891_s28  ;;  %p65_p3 = scmp.ne.s32.totalorder %s1891_s28, %s1887_s27 }
  0x7d   : > { %s2754_s20 = smov (!%p2705_p0, %s43_s20), %s1911_s10  ;;  %p2706_p13 = scmp.eq.s32.totalorder %s1915_s11, 0 }
  0x7e   : > { %p45_p7 = scmp.ge.s32.totalorder %s2754_s20, 2  ;;  %p185_p12 = scmp.eq.s32.totalorder %s2035_s12, 3 }
  0x7f   : > { %p2193_p9 = por %p2706_p13, %p59_p4  ;;  %p2709_p5 = scmp.eq.s32.totalorder %s2035_s12, 0 }
  0x80   : > { %s2756_s20 = smov (%p45_p7, %s2754_s20), 0  ;;  %p2206_p6 = por %p185_p12, %p59_p4 }
  0x81   : > { %2708 = sst [smem:[#allocation26_spill]] %s2756_s20  ;;  %p2202_p2 = por %p2709_p5, %p65_p3 }
  0x82   : > { %s2711_s21 = scalar_select %p2206_p6, 1, 0 }
  0x83   : > { %s47_s24 = ssub.s32 %s1911_s10, %s2756_s20  ;;  %p191_p8 = scmp.eq.s32.totalorder %s2677_s16, 3 }
  0x84   : > { %2712 = sst [smem:[#allocation27_spill]] %s2711_s21  ;;  %s49_s18 = sor.u32 %s2097_s15, %s47_s24 }
  0x85   : > { %s291_s7 = sand.u32 1, %s1895_s29   ;;  %p50_p11 = scmp.eq.s32.totalorder %s49_s18, 0 }
  0x86   : > { %p2216_p10 = por %p191_p8, %p65_p3  ;;  %s1370_s1 = sshll.u32 %s291_s7, 3 }
  0x87   : > { %s2221_s26 = scalar_select %p50_p11, %s1895_s29, %s52_s14  }
  0x88   : > { %s2713_s6 = scalar_select %p2216_p10, 1, 0 }
  0x89   : > { %s1371_s30 = sshll.u32 %s1911_s10, 1  ;;  %s295_s27 = scalar_lea.vmem [#allocation2], %s1370_s1 }
  0x8a   : > { %s300_s4 = sadd.s32 %s1907_s9, %s1371_s30  ;;  %s304_s21 = sshll.u32 %s295_s27, 4  ;;  %s2225_s21 = int_to_ptr.vmem [resolvable:$true] %s304_s21 }
  0x8b   : > { %s1372_s8 = sshll.u32 %s300_s4, 7  ;;  %p2714_p1 = scmp.lt.s32.totalorder %s1915_s11, 4 }
  0x8c   : > { %s2230_s15 = scalar_lea.hbm %s2649_s0, %s1372_s8  ;;  %s2716_s24 = sshll.u32 %s1907_s9, 7 }
  0x8d   : > { %p2236_p0 = pnand %p2714_p1, %p2193_p9  ;;  %s2245_s18 = scalar_lea.hbm %s2651_s2, %s2716_s24 }
  0x8e   : > { %s333_s8 = scalar_lea.vmem [#allocation7], %s2112_s3  ;;  %s292_s20 = scalar_lea.sflag [#allocation3], %s291_s7 }
  0x8f   : > { %s340_s16 = sshll.u32 %s333_s8, 4  ;;  %s1665_s5 = scalar_lea.hbm %s2230_s15, 128  ;;  %s2248_s16 = int_to_ptr.vmem [resolvable:$true] %s340_s16 }
  0x90   : > { %p1666_p4 = scmp.ne.s32.totalorder %s2230_s15, %s1665_s5  ;;  %p1667_p7 = pneg %p2236_p0 }
  0x91   : > { %s1670_s27 = scalar_lea.hbm %s2649_s0, 512  ;;  %p1671_p9 = scmp.lt.u32.totalorder %s2230_s15, %s2649_s0 }
  0x92   : > { %p1668_p3 = pnand %p1667_p7, %p1666_p4  ;;  %p1672_p12 = scmp.lt.u32.totalorder %s1670_s27, %s1665_s5 }
  0x93   : > { %p1674_p8 = scmp.lt.u32.totalorder %s1665_s5, %s2230_s15 }
  0x94   : > { %p1669_p13 = pneg %p1668_p3  ;;  %p1673_p5 = por %p1672_p12, %p1671_p9 }
  0x96   : > { %p1675_p11 = por %p1674_p8, %p1673_p5 }
  0x98   : > { %p1676_p1 = pnand %p1675_p11, %p1669_p13 }
  0x9a   : > { %1679 = shalt.err (!%p1676_p1)
}
  0x9b   : > { %s1680_s3 = scalar_lea.vmem %s2225_s21, 128  ;;  %s1922_s7 = smov [#allocation2]  }
  0x9c   : > { %p1681_p4 = scmp.ne.s32.totalorder %s2225_s21, %s1680_s3  ;;  %s1685_s8 = sshll.u32 %s1922_s7, 4  ;;  %s1686_s8 = int_to_ptr.vmem [resolvable:$false] %s1685_s8 }
  0x9d   : > { %s1687_s1 = scalar_lea.vmem %s1686_s8, 256  ;;  %p1688_p6 = scmp.lt.s32.totalorder %s2225_s21, %s1686_s8 }
  0x9e   : > { %p1683_p3 = pnand %p1681_p4, %p1667_p7  ;;  %p1689_p9 = scmp.lt.s32.totalorder %s1687_s1, %s1680_s3 }
  0xa0   : > { %p1684_p10 = pneg %p1683_p3  ;;  %p1690_p12 = por %p1689_p9, %p1688_p6 }
  0xa2   : > { %p1691_p5 = pnand %p1690_p12, %p1684_p10 }
  0xa4   : > { %1694 = shalt.err (!%p1691_p5)
}
  0xa5   : > { %1448 = dma.hbm_to_vmem [thread:$0]  (!%p2236_p0), %s2230_s15, 128, %s2225_s21, %s292_s20  }
  0xa6   : > { %s1695_s5 = scalar_lea.hbm %s2245_s18, 128  ;;  %p2717_p13 = scmp.ne.s32.totalorder %s2701_s23, 0 }
  0xa7   : > { %p1696_p7 = scmp.ne.s32.totalorder %s2245_s18, %s1695_s5  ;;  %s1700_s4 = scalar_lea.hbm %s2651_s2, 256 }
  0xa8   : > { %p2718_p8 = pneg %p2717_p13  ;;  %p1701_p6 = scmp.lt.u32.totalorder %s2245_s18, %s2651_s2 }
  0xa9   : > { %p1702_p10 = scmp.lt.u32.totalorder %s1700_s4, %s1695_s5  ;;  %p1704_p3 = scmp.lt.u32.totalorder %s1695_s5, %s2245_s18 }
  0xaa   : > { %p1698_p11 = pnand %p1696_p7, %p2718_p8 }
  0xab   : > { %p1703_p4 = por %p1702_p10, %p1701_p6 }
  0xac   : > { %p1699_p1 = pneg %p1698_p11 }
  0xad   : > { %p1705_p9 = por %p1704_p3, %p1703_p4 }
  0xaf   : > { %p1706_p12 = pnand %p1705_p9, %p1699_p1 }
  0xb1   : > { %1709 = shalt.err (!%p1706_p12)
}
  0xb2   : > { %s1710_s21 = scalar_lea.vmem %s2248_s16, 128  ;;  %p2719_p5 = pmov %p2718_p8 }
  0xb3   : > { %p1711_p0 = scmp.ne.s32.totalorder %s2248_s16, %s1710_s21  ;;  %s1923_s15 = smov [#allocation7]  }
  0xb4   : > { %s1715_s20 = sshll.u32 %s1923_s15, 4  ;;  %s1716_s20 = int_to_ptr.vmem [resolvable:$false] %s1715_s20 }
  0xb5   : > { %p1713_p7 = pnand %p1711_p0, %p2719_p5  ;;  %s1717_s3 = scalar_lea.vmem %s1716_s20, 256 }
  0xb6   : > { %p1718_p11 = scmp.lt.s32.totalorder %s2248_s16, %s1716_s20  ;;  %p1719_p6 = scmp.lt.s32.totalorder %s1717_s3, %s1710_s21 }
  0xb7   : > { %p1714_p8 = pneg %p1713_p7 }
  0xb8   : > { %p1720_p10 = por %p1719_p6, %p1718_p11 }
  0xba   : > { %p1721_p4 = pnand %p1720_p10, %p1714_p8 }
  0xbc   : > { %1724 = shalt.err (!%p1721_p4)
}
  0xbd   : > { %1454 = dma.hbm_to_vmem [thread:$0]  (!%p2717_p13), %s2245_s18, 128, %s2248_s16, %s2133_s19  }
  0xbe   : > { %p2720_p1 = scmp.ne.s32.totalorder %s2691_s13, 0 }
  0xbf   : > { %s2302_s7 = sand.u32 (!%p2720_p1), 1, %s1891_s28  }
  0xc0   : > { %349 = sbr.rel (%p2720_p1) target bundleno = 1015 (0x3f7), region = 40  ;;  %s1378_s8 = sshll.u32 (!%p2720_p1), %s2302_s7, 3 }
  0xc1   : > { %s352_s1 = scalar_lea.sflag (!%p2720_p1), [#allocation3], %s2302_s7  ;;  %s355_s5 = scalar_lea.vmem (!%p2720_p1), [#allocation2], %s1378_s8 }
  0xc7   : > { %1854 = dma.done.wait (%p2202_p2), %s352_s1, 128  }
  0xc8   : > { %1856 = vsyncadd (%p2202_p2), %s352_s1, 4294967168  ;;  %s360_s13 = sand.u32 1, %s2035_s12   ;;  %s362_s23 = sand.u32 1, %s1879_s25  }
  0xc9   : > { %s2312_s19 = sshll.u32 %s362_s23, 3  ;;  %s361_s18 = scalar_lea.sflag [#allocation6], %s360_s13 }
  0xca   : > { %s364_s16 = scalar_lea.vmem [#allocation5], %s2312_s19  ;;  %p2721_p13 = scmp.ne.s32.totalorder %s2698_s17, 0 }
  0xcc   : > { %1858 = dma.done.wait (%p2721_p13), %s361_s18, 256  }
  0xcd   : > { %1860 = vsyncadd (%p2721_p13), %s361_s18, 4294967040  ;;  %s373_s22 = scalar_lea.vmem [#allocation7], %s2312_s19  ;;  %p2722_p2 = scmp.eq.s32.totalorder %s2035_s12, 0 }
  0xcf   : > { %1862 = dma.done.wait (%p2722_p2), [#allocation9], 272   ;;  %p2723_p3 = pmov %p2722_p2 }
  0xd0   : > { %v433_v0 = vld [vmem:[%s355_s5] sm:$0xff]  ;;  %vm435_vm0 = vcmask 261120   ;;  %v1575_v3 = vld [vmem:[#allocation8] sm:$0xff]   ;;  %v1924_v4 = vmov 0.0   ;;  %vm1925_vm1 = vmmov 0   ;;  %v1576_v5 = vld [vmem:[#allocation8 + $0x8] sm:$0xff]   ;;  %v529_v20 = vlaneseq }
  0xd1   : > { %1864 = vsyncadd (%p2723_p3), [#allocation9], 4294967024  ;;  %v434_v1 = vmul.f32 %v433_v0, %v433_v0  ;;  %1410 = vmatprep.subr.bf16.mxu0 %v1924_v4  ;;  %1414 = vmatprep.mubr.msk.bf16.mxu0 %vm1925_vm1, %v1924_v4  ;;  %v1386_v10 = vld [vmem:[#allocation10] ss:$0 sm:$0xff]  ;;  %s1926_s17 = smov 112   ;;  %s1927_s30 = smov 120  }
  0xd2   : > { %1411 = vmatpush3.bf16.msra.mxu0 %v1575_v3  ;;  %s1928_s27 = smov 104   ;;  %s1929_s4 = smov 96   ;;  %v1930_v18 = vmov 1983009808   ;;  %v1931_v21 = vmov 1934713408  }
  0xd3   : > { %v436_v2 = vsel %vm435_vm0, %v434_v1, 0.0  ;;  %1412 = vmatprep.subr.bf16.mxu0 %v1924_v4  ;;  %v527_v19 = vunpack.c.l.s4 %v1930_v18  ;;  %v559_v22 = vunpack.c.l.s4 %v1931_v21  ;;  %v530_v24 = vshrl.u32 %v529_v20, 7  ;;  %s2679_s24 = smov 64   ;;  %s1933_s14 = smov 4  }
  0xd4   : > { %437 = vadd.xlane.f32.xlu0 %v436_v2  ;;  %s1934_s21 = smov 124   ;;  %vm696_vm2 = vcmask 31744   ;;  %vm1069_vm3 = vcmask 60416   ;;  %s2724_s15 = sld [smem:[#allocation23_spill]] }
  0xd5   : > { %v528_v23 = vunpack.c.0.s8 %v527_v19  ;;  %v560_v27 = vunpack.c.0.s8 %v559_v22  ;;  %s2447_s20 = sshll.u32 %s2302_s7, 4  ;;  %s2725_s3 = sld [smem:[#allocation22_spill]] }
  0xd6   : > { %1413 = vmatpush3.bf16.msra.mxu0 %v1576_v5  ;;  %s2462_s5 = scalar_lea.vmem [#allocation14], %s2447_s20  ;;  %s417_s23 = scalar_lea.vmem [#allocation11], %s2447_s20 }
  0xd7   : > { %v2331_v28 = vsub.s32 %v528_v23, %v530_v24  ;;  %v2335_v34 = vsub.s32 %v560_v27, %v530_v24  ;;  %s1115_s19 = sshll.u32 %s417_s23, 4  ;;  %s2726_s18 = sld [smem:[#allocation27_spill]]  ;;  %s2481_s19 = int_to_ptr.vmem [resolvable:$true] %s1115_s19 }
  0xda   : > { %s1399_s8 = sshll.u32 %s2724_s15, 3  ;;  %s1725_s15 = scalar_lea.vmem %s2481_s19, 256 }
  0xdb   : > { %s1112_s1 = sadd.s32 %s2725_s3, %s1399_s8  ;;  %p1726_p9 = scmp.ne.s32.totalorder %s2481_s19, %s1725_s15 }
  0xdc   : > { %s1935_s3 = smov [#allocation11]  }
  0xdd   : > { %p2729_p12 = scmp.ne.s32.totalorder %s2726_s18, 0  ;;  %s1729_s8 = sshll.u32 %s1935_s3, 4  ;;  %s1730_s8 = int_to_ptr.vmem [resolvable:$false] %s1729_s8 }
  0xde   : > { %p1732_p7 = scmp.lt.s32.totalorder %s2481_s19, %s1730_s8 }
  0xdf   : > { %p1727_p0 = pnand %p1726_p9, %p2729_p12 }
  0xe1   : > { %p1728_p5 = pneg %p1727_p0 }
 0x161   : > { %v438_v6 = vpop.xlane.xlu0 %437 }
 0x162   : > { %v440_v7 = vmul.f32 0.03125, %v438_v6 }
 0x164   : > { %v441_v8 = vadd.f32 1e-05, %v440_v7 }
 0x166   : > { %1577 = vrsqrt.f32 %v441_v8 }
 0x170   : > { %v1578_v9 = vpop.eup %1577 }
 0x171   : > { %v443_v11 = vmul.f32 %v1578_v9, %v433_v0 }
 0x173   : > { %v451_v12 = vmul.f32 %v1386_v10, %v443_v11 }
 0x175   : > { %v452_v13 = vpack.c.bf16 %v451_v12, %v451_v12 }
 0x177   : > { %1415 = vmatmul.mubr.msk.bf16.vlgmr.msra.gmra.mrb[0].mxu0 %vm435_vm0, %v452_v13 }
 0x24a   : > { %v506_v14 = vpop.f32.mrb[0].mxu0 }
 0x24b   : > { %518 = vrot.lane.b32.xlu1 %v506_v14, %s1926_s17  ;;  %515 = vrot.lane.b32.xlu0 %v506_v14, %s1927_s30  ;;  %v1416_v15 = vpop.f32.mrb[1].mxu0  ;;  %s2727_s30 = sld [smem:[#allocation31_spill]] }
 0x24c   : > { %v509_v16 = vpop.f32.mrb[2].mxu0 }
 0x24d   : > { %v1417_v17 = vpop.f32.mrb[3].mxu0 }
 0x24f   : > { %521 = vrot.lane.b32.xlu1 %v506_v14, %s1928_s27 }
 0x253   : > { %713 = vrot.lane.b32.xlu1 %v506_v14, %s1929_s4 }
 0x2bd   : > { %v519_v25 = vpop.permute.xlu1 %518  ;;  %v516_v26 = vpop.permute.xlu0 %515 }
 0x2be   : > { %915 = vrot.lane.b32.xlu0 %v516_v26, %s2679_s24  ;;  %715 = vrot.lane.b32.xlu1 %v516_v26, %s1929_s4  ;;  %v524_v29 = vcombine.low %v506_v14, %v519_v25  ;;  %v525_v30 = vcombine.high %v506_v14, %v519_v25 }
 0x2c0   : > { %v532_v35 = vrot.slane %v524_v29, %v2331_v28  ;;  %v539_v36 = vrot.slane %v525_v30, %v2331_v28 }
 0x2c1   : > { %v522_v31 = vpop.permute.xlu1 %521 }
 0x2c2   : > { %v540_v32 = vcombine.low %v516_v26, %v522_v31  ;;  %v541_v33 = vcombine.high %v516_v26, %v522_v31  ;;  %919 = vrot.lane.b32.xlu0 %v522_v31, %s2679_s24  ;;  %717 = vrot.lane.b32.xlu1 %v519_v25, %s1929_s4 }
 0x2c4   : > { %v548_v37 = vrot.slane %v540_v32, %v2331_v28  ;;  %v555_v38 = vrot.slane %v541_v33, %v2331_v28 }
 0x2c5   : > { %v714_v7 = vpop.permute.xlu1 %713 }
 0x2c6   : > { %v556_v39 = vcombine.low %v532_v35, %v548_v37  ;;  %v557_v40 = vcombine.high %v532_v35, %v548_v37  ;;  %v572_v41 = vcombine.low %v539_v36, %v555_v38  ;;  %v573_v42 = vcombine.high %v539_v36, %v555_v38  ;;  %719 = vrot.lane.b32.xlu1 %v522_v31, %s1929_s4  ;;  %s2728_s4 = smov %s2727_s30 }
 0x2c8   : > { %v564_v43 = vrot.slane %v556_v39, %v2335_v34  ;;  %v571_v44 = vrot.slane %v557_v40, %v2335_v34  ;;  %v580_v45 = vrot.slane %v572_v41, %v2335_v34  ;;  %v587_v46 = vrot.slane %v573_v42, %v2335_v34 }
 0x2ca   : > { %913 = vrot.lane.b32.xlu1 %v506_v14, %s2679_s24  ;;  %v592_v47 = vcombine.low %v564_v43, %v571_v44  ;;  %v1390_v48 = vcombine.high %v564_v43, %v571_v44  ;;  %v608_v49 = vcombine.low %v580_v45, %v587_v46  ;;  %v1391_v50 = vcombine.high %v580_v45, %v587_v46 }
 0x2cc   : > { %v599_v51 = vrot.slane %v592_v47, %v2331_v28  ;;  %v607_v52 = vrot.slane %v1390_v48, %v2331_v28  ;;  %v615_v53 = vrot.slane %v608_v49, %v2331_v28  ;;  %v623_v54 = vrot.slane %v1391_v50, %v2331_v28 }
 0x2ce   : > { %917 = vrot.lane.b32.xlu1 %v519_v25, %s2679_s24  ;;  %v624_v55 = vcombine.low %v599_v51, %v607_v52  ;;  %v640_v56 = vcombine.low %v615_v53, %v623_v54  ;;  %v625_v57 = vcombine.high %v599_v51, %v607_v52  ;;  %v641_v58 = vcombine.high %v615_v53, %v623_v54 }
 0x2d0   : > { %v632_v59 = vrot.slane %v624_v55, %v2335_v34  ;;  %v648_v60 = vrot.slane %v640_v56, %v2335_v34  ;;  %v639_v63 = vrot.slane %v625_v57, %v2335_v34  ;;  %v655_v0 = vrot.slane %v641_v58, %v2335_v34 }
 0x2d2   : > { %v2354_v61 = vcombine.high %v632_v59, %v648_v60  ;;  %v2356_v62 = vcombine.low %v632_v59, %v648_v60  ;;  %v2364_v1 = vcombine.high %v639_v63, %v655_v0  ;;  %v2366_v2 = vcombine.low %v639_v63, %v655_v0 }
 0x2d4   : > { %686 = vrot.lane.b32.xlu0 %v2354_v61, %s1933_s14  ;;  %684 = vrot.lane.b32.xlu1 %v2356_v62, %s1933_s14  ;;  %v661_v3 = vsub.f32 0.0, %v2354_v61  ;;  %v660_v4 = vsub.f32 0.0, %v2356_v62  ;;  %v663_v5 = vsub.f32 0.0, %v2364_v1  ;;  %v662_v6 = vsub.f32 0.0, %v2366_v2 }
 0x2d8   : > { %690 = vrot.lane.b32.xlu0 %v2364_v1, %s1933_s14  ;;  %688 = vrot.lane.b32.xlu1 %v2366_v2, %s1933_s14 }
 0x2dc   : > { %670 = vrot.lane.b32.xlu0 %v661_v3, %s1934_s21  ;;  %668 = vrot.lane.b32.xlu1 %v660_v4, %s1934_s21 }
 0x2e0   : > { %674 = vrot.lane.b32.xlu0 %v663_v5, %s1934_s21  ;;  %672 = vrot.lane.b32.xlu1 %v662_v6, %s1934_s21  ;;  %v2404_v5 = vld [vmem:[%s364_s16] sm:$0xff]  ;;  %s2477_s16 = sshll.u32 %s1112_s1, 6  ;;  %s1731_s1 = scalar_lea.vmem %s1730_s8, 512 }
 0x2e1   : > { %s2487_s27 = scalar_lea.hbm %s2727_s30, %s2477_s16  ;;  %p1733_p8 = scmp.lt.s32.totalorder %s1731_s1, %s1725_s15 }
 0x2e3   : > { %p1734_p11 = por %p1733_p8, %p1732_p7 }
 0x2e5   : > { %p1735_p6 = pnand %p1734_p11, %p1728_p5 }
 0x330   : > { %v716_v8 = vpop.permute.xlu1 %715  ;;  %v916_v10 = vpop.permute.xlu0 %915 }
 0x334   : > { %v718_v9 = vpop.permute.xlu1 %717  ;;  %v920_v21 = vpop.permute.xlu0 %919 }
 0x335   : > { %v725_v11 = vcombine.low %v714_v7, %v718_v9  ;;  %v726_v12 = vcombine.high %v714_v7, %v718_v9  ;;  %v941_v31 = vcombine.low %v916_v10, %v920_v21  ;;  %v942_v32 = vcombine.high %v916_v10, %v920_v21 }
 0x337   : > { %v733_v16 = vrot.slane %v725_v11, %v2331_v28  ;;  %v740_v17 = vrot.slane %v726_v12, %v2331_v28  ;;  %v949_v45 = vrot.slane %v941_v31, %v2331_v28  ;;  %v956_v46 = vrot.slane %v942_v32, %v2331_v28 }
 0x338   : > { %v720_v13 = vpop.permute.xlu1 %719 }
 0x339   : > { %v741_v14 = vcombine.low %v716_v8, %v720_v13  ;;  %v742_v15 = vcombine.high %v716_v8, %v720_v13 }
 0x33b   : > { %v749_v18 = vrot.slane %v741_v14, %v2331_v28  ;;  %v756_v19 = vrot.slane %v742_v15, %v2331_v28 }
 0x33c   : > { %v914_v20 = vpop.permute.xlu1 %913 }
 0x33d   : > { %v757_v22 = vcombine.low %v733_v16, %v749_v18  ;;  %v758_v23 = vcombine.high %v733_v16, %v749_v18  ;;  %v773_v24 = vcombine.low %v740_v17, %v756_v19  ;;  %v774_v25 = vcombine.high %v740_v17, %v756_v19 }
 0x33e   : > { %v702_v16 = vmul.f32 %v2354_v61, %v2404_v5  ;;  %v701_v17 = vmul.f32 %v2356_v62, %v2404_v5  ;;  %v704_v18 = vmul.f32 %v2364_v1, %v2404_v5 }
 0x33f   : > { %v765_v26 = vrot.slane %v757_v22, %v2335_v34  ;;  %v772_v27 = vrot.slane %v758_v23, %v2335_v34  ;;  %v781_v29 = vrot.slane %v773_v24, %v2335_v34  ;;  %v788_v30 = vrot.slane %v774_v25, %v2335_v34 }
 0x340   : > { %v918_v33 = vpop.permute.xlu1 %917 }
 0x341   : > { %v793_v35 = vcombine.low %v765_v26, %v772_v27  ;;  %v1392_v36 = vcombine.high %v765_v26, %v772_v27  ;;  %v809_v37 = vcombine.low %v781_v29, %v788_v30  ;;  %v1393_v38 = vcombine.high %v781_v29, %v788_v30  ;;  %v2434_v29 = vld [vmem:[%s373_s22] sm:$0xff] }
 0x342   : > { %v925_v39 = vcombine.low %v914_v20, %v918_v33  ;;  %v926_v40 = vcombine.high %v914_v20, %v918_v33  ;;  %v703_v33 = vmul.f32 %v2366_v2, %v2404_v5 }
 0x343   : > { %v800_v41 = vrot.slane %v793_v35, %v2331_v28  ;;  %v808_v42 = vrot.slane %v1392_v36, %v2331_v28  ;;  %v816_v43 = vrot.slane %v809_v37, %v2331_v28  ;;  %v824_v44 = vrot.slane %v1393_v38, %v2331_v28 }
 0x344   : > { %v933_v47 = vrot.slane %v925_v39, %v2331_v28  ;;  %v940_v48 = vrot.slane %v926_v40, %v2331_v28 }
 0x345   : > { %v825_v49 = vcombine.low %v800_v41, %v808_v42  ;;  %v826_v50 = vcombine.high %v800_v41, %v808_v42  ;;  %v841_v51 = vcombine.low %v816_v43, %v824_v44  ;;  %v842_v52 = vcombine.high %v816_v43, %v824_v44 }
 0x346   : > { %v957_v53 = vcombine.low %v933_v47, %v949_v45  ;;  %v958_v54 = vcombine.high %v933_v47, %v949_v45  ;;  %v973_v55 = vcombine.low %v940_v48, %v956_v46  ;;  %v974_v56 = vcombine.high %v940_v48, %v956_v46  ;;  %v687_v57 = vpop.permute.xlu0 %686  ;;  %v685_v58 = vpop.permute.xlu1 %684 }
 0x347   : > { %v833_v59 = vrot.slane %v825_v49, %v2335_v34  ;;  %v849_v60 = vrot.slane %v841_v51, %v2335_v34  ;;  %v840_v8 = vrot.slane %v826_v50, %v2335_v34  ;;  %v856_v9 = vrot.slane %v842_v52, %v2335_v34 }
 0x348   : > { %v965_v63 = vrot.slane %v957_v53, %v2335_v34  ;;  %v972_v0 = vrot.slane %v958_v54, %v2335_v34  ;;  %v981_v3 = vrot.slane %v973_v55, %v2335_v34  ;;  %v988_v4 = vrot.slane %v974_v56, %v2335_v34 }
 0x349   : > { %v2406_v6 = vcombine.high %v833_v59, %v849_v60  ;;  %v2408_v7 = vcombine.low %v833_v59, %v849_v60  ;;  %v2428_v25 = vcombine.high %v840_v8, %v856_v9  ;;  %v2430_v61 = vcombine.low %v840_v8, %v856_v9 }
 0x34a   : > { %v993_v10 = vcombine.low %v965_v63, %v972_v0  ;;  %v1394_v11 = vcombine.high %v965_v63, %v972_v0  ;;  %v1009_v12 = vcombine.low %v981_v3, %v988_v4  ;;  %v1395_v13 = vcombine.high %v981_v3, %v988_v4  ;;  %v691_v14 = vpop.permute.xlu0 %690  ;;  %v689_v15 = vpop.permute.xlu1 %688 }
 0x34b   : > { %887 = vrot.lane.b32.xlu0 %v2406_v6, %s1933_s14  ;;  %885 = vrot.lane.b32.xlu1 %v2408_v7, %s1933_s14  ;;  %v862_v23 = vsub.f32 0.0, %v2406_v6  ;;  %v861_v24 = vsub.f32 0.0, %v2408_v7  ;;  %v864_v41 = vsub.f32 0.0, %v2428_v25  ;;  %v863_v42 = vsub.f32 0.0, %v2430_v61 }
 0x34c   : > { %v1000_v19 = vrot.slane %v993_v10, %v2331_v28  ;;  %v1008_v20 = vrot.slane %v1394_v11, %v2331_v28  ;;  %v1016_v21 = vrot.slane %v1009_v12, %v2331_v28  ;;  %v1024_v22 = vrot.slane %v1395_v13, %v2331_v28 }
 0x34e   : > { %v1025_v62 = vcombine.low %v1000_v19, %v1008_v20  ;;  %v1026_v26 = vcombine.high %v1000_v19, %v1008_v20  ;;  %v1041_v1 = vcombine.low %v1016_v21, %v1024_v22  ;;  %v1042_v27 = vcombine.high %v1016_v21, %v1024_v22  ;;  %v671_v30 = vpop.permute.xlu0 %670  ;;  %v669_v31 = vpop.permute.xlu1 %668 }
 0x34f   : > { %v698_v28 = vsel %vm696_vm2, %v671_v30, %v687_v57  ;;  %v697_v32 = vsel %vm696_vm2, %v669_v31, %v685_v58  ;;  %871 = vrot.lane.b32.xlu0 %v862_v23, %s1934_s21  ;;  %869 = vrot.lane.b32.xlu1 %v861_v24, %s1934_s21 }
 0x350   : > { %v1033_v35 = vrot.slane %v1025_v62, %v2335_v34  ;;  %v1040_v36 = vrot.slane %v1026_v26, %v2335_v34  ;;  %v1049_v37 = vrot.slane %v1041_v1, %v2335_v34  ;;  %v1056_v38 = vrot.slane %v1042_v27, %v2335_v34 }
 0x351   : > { %v706_v39 = vmul.f32 %v698_v28, %v2434_v29  ;;  %v705_v40 = vmul.f32 %v697_v32, %v2434_v29 }
 0x352   : > { %v1057_v2 = vcombine.low %v1033_v35, %v1049_v37  ;;  %v1058_v43 = vcombine.high %v1033_v35, %v1049_v37  ;;  %v1059_v44 = vcombine.low %v1040_v36, %v1056_v38  ;;  %v1060_v45 = vcombine.high %v1040_v36, %v1056_v38  ;;  %v675_v46 = vpop.permute.xlu0 %674  ;;  %v673_v47 = vpop.permute.xlu1 %672 }
 0x353   : > { %v710_v34 = vadd.f32 %v706_v39, %v702_v16  ;;  %v709_v48 = vadd.f32 %v705_v40, %v701_v17  ;;  %v700_v49 = vsel %vm696_vm2, %v675_v46, %v691_v14  ;;  %v699_v50 = vsel %vm696_vm2, %v673_v47, %v689_v15  ;;  %875 = vrot.lane.b32.xlu0 %v864_v41, %s1934_s21 }
 0x354   : > { %v1082_v51 = vpack.c.bf16 %v1057_v2, %v1057_v2  ;;  %v1083_v52 = vpack.c.bf16 %v1058_v43, %v1058_v43  ;;  %v1084_v53 = vpack.c.bf16 %v1059_v44, %v1059_v44  ;;  %v1085_v54 = vpack.c.bf16 %v1060_v45, %v1060_v45  ;;  %873 = vrot.lane.b32.xlu1 %v863_v42, %s1934_s21  ;;  %s1091_s21 = scalar_lea.sflag [#allocation4], %s2302_s7 }
 0x355   : > { %v1062_v55 = vmul.f32 0.35355338, %v710_v34  ;;  %v1061_v56 = vmul.f32 0.35355338, %v709_v48  ;;  %v708_v57 = vmul.f32 %v700_v49, %v2434_v29  ;;  %v707_v58 = vmul.f32 %v699_v50, %v2434_v29 }
 0x356   : > { %1086 = vst.msk [vmem:[%s2462_s5] sm:$0xf] %vm1069_vm3, %v1082_v51  ;;  %1087 = vst.msk [vmem:[%s2462_s5 + $0x4] sm:$0xf] %vm1069_vm3, %v1083_v52 }
 0x357   : > { %1088 = vst.msk [vmem:[%s2462_s5 + $0x8] sm:$0xf] %vm1069_vm3, %v1084_v53  ;;  %1089 = vst.msk [vmem:[%s2462_s5 + $0xc] sm:$0xf] %vm1069_vm3, %v1085_v54  ;;  %v1066_v59 = vpack.c.bf16 %v1062_v55, %v1062_v55  ;;  %v1065_v60 = vpack.c.bf16 %v1061_v56, %v1061_v56  ;;  %v712_v63 = vadd.f32 %v708_v57, %v704_v18  ;;  %891 = vrot.lane.b32.xlu0 %v2428_v25, %s1933_s14 }
 0x358   : > { %v711_v0 = vadd.f32 %v707_v58, %v703_v33  ;;  %889 = vrot.lane.b32.xlu1 %v2430_v61, %s1933_s14 }
 0x359   : > { %1071 = vst.msk [vmem:[%s417_s23 + $0x4] sm:$0xf] %vm1069_vm3, %v1066_v59  ;;  %1070 = vst.msk [vmem:[%s417_s23] sm:$0xf] %vm1069_vm3, %v1065_v60  ;;  %v1064_v3 = vmul.f32 0.35355338, %v712_v63 }
 0x35a   : > { %v1063_v4 = vmul.f32 0.35355338, %v711_v0 }
 0x35b   : > { %v1068_v8 = vpack.c.bf16 %v1064_v3, %v1064_v3 }
 0x35c   : > { %v1067_v9 = vpack.c.bf16 %v1063_v4, %v1063_v4 }
 0x35d   : > { %1073 = vst.msk [vmem:[%s417_s23 + $0xc] sm:$0xf] %vm1069_vm3, %v1068_v8 }
 0x35e   : > { %1072 = vst.msk [vmem:[%s417_s23 + $0x8] sm:$0xf] %vm1069_vm3, %v1067_v9 }
 0x35f   : > { %1738 = shalt.err (!%p1735_p6)
}
 0x360   : > { %s1739_s23 = scalar_lea.hbm %s2487_s27, 256  ;;  %s1743_s30 = scalar_lea.hbm %s2728_s4, 1024 }
 0x361   : > { %p1740_p10 = scmp.ne.s32.totalorder %s2487_s27, %s1739_s23  ;;  %p1744_p13 = scmp.lt.u32.totalorder %s2487_s27, %s2728_s4 }
 0x362   : > { %p1745_p2 = scmp.lt.u32.totalorder %s1743_s30, %s1739_s23  ;;  %p1747_p9 = scmp.lt.u32.totalorder %s1739_s23, %s2487_s27 }
 0x363   : > { %p1741_p4 = pnand %p1740_p10, %p2729_p12 }
 0x364   : > { %p1746_p3 = por %p1745_p2, %p1744_p13 }
 0x365   : > { %p1742_p1 = pneg %p1741_p4 }
 0x366   : > { %p1748_p0 = por %p1747_p9, %p1746_p3 }
 0x368   : > { %p1749_p5 = pnand %p1748_p0, %p1742_p1 }
 0x36a   : > { %1752 = shalt.err (!%p1749_p5)
}
 0x36b   : > { %s1936_s15 = smov 128   ;;  %v902_v16 = vmul.f32 %v2406_v6, %v2404_v5  ;;  %v901_v18 = vmul.f32 %v2408_v7, %v2404_v5  ;;  %s424_s7 = scalar_lea.vmem [#allocation12], %s2447_s20  ;;  %v904_v7 = vmul.f32 %v2428_v25, %v2404_v5  ;;  %v903_v31 = vmul.f32 %v2430_v61, %v2404_v5 }
 0x36c   : > { %1432 = dma.vmem_to_hbm [thread:$0]  (%p2729_p12), %s2481_s19, 256, %s2487_s27, %s1091_s21, %s2679_s24, %s1936_s15, %s1933_s14  }
 0x36d   : > { %s1132_s19 = sshll.u32 %s424_s7, 4  ;;  %s1149_s20 = sshll.u32 %s2462_s5, 4  ;;  %s2538_s19 = int_to_ptr.vmem [resolvable:$true] %s1132_s19  ;;  %s2546_s20 = int_to_ptr.vmem [resolvable:$true] %s1149_s20 }
 0x36e   : > { %s2730_s1 = sld [smem:[#allocation32_spill]]  ;;  %s2731_s5 = sld [smem:[#allocation33_spill]] }
 0x36f   : > { %s2558_s3 = scalar_lea.sflag [#allocation13], %s360_s13  ;;  %s1753_s8 = scalar_lea.vmem %s2538_s19, 256 }
 0x370   : > { %p1754_p7 = scmp.ne.s32.totalorder %s2538_s19, %s1753_s8  ;;  %s1937_s27 = smov [#allocation12]  }
 0x371   : > { %s1757_s21 = sshll.u32 %s1937_s27, 4  ;;  %s1758_s21 = int_to_ptr.vmem [resolvable:$false] %s1757_s21 }
 0x372   : > { %p1755_p8 = pnand %p1754_p7, %p2729_p12  ;;  %s1759_s24 = scalar_lea.vmem %s1758_s21, 512 }
 0x373   : > { %p1760_p6 = scmp.lt.s32.totalorder %s2538_s19, %s1758_s21  ;;  %p1761_p10 = scmp.lt.s32.totalorder %s1759_s24, %s1753_s8 }
 0x374   : > { %s2544_s23 = scalar_lea.hbm %s2730_s1, %s2477_s16  ;;  %s2553_s30 = scalar_lea.hbm %s2731_s5, %s2477_s16 }
 0x375   : > { %p1756_p11 = pneg %p1755_p8  ;;  %p1762_p4 = por %p1761_p10, %p1760_p6 }
 0x377   : > { %p1763_p1 = pnand %p1762_p4, %p1756_p11 }
 0x3bd   : > { %v888_v10 = vpop.permute.xlu0 %887  ;;  %v886_v11 = vpop.permute.xlu1 %885 }
 0x3c1   : > { %v872_v12 = vpop.permute.xlu0 %871  ;;  %v870_v13 = vpop.permute.xlu1 %869 }
 0x3c2   : > { %v898_v14 = vsel %vm696_vm2, %v872_v12, %v888_v10  ;;  %v897_v15 = vsel %vm696_vm2, %v870_v13, %v886_v11 }
 0x3c3   : > { %v906_v17 = vmul.f32 %v898_v14, %v2434_v29  ;;  %v905_v19 = vmul.f32 %v897_v15, %v2434_v29 }
 0x3c5   : > { %v910_v20 = vadd.f32 %v906_v17, %v902_v16  ;;  %v909_v21 = vadd.f32 %v905_v19, %v901_v18  ;;  %v876_v22 = vpop.permute.xlu0 %875 }
 0x3c6   : > { %v874_v23 = vpop.permute.xlu1 %873 }
 0x3c7   : > { %v1075_v24 = vpack.c.bf16 %v910_v20, %v910_v20  ;;  %v1074_v62 = vpack.c.bf16 %v909_v21, %v909_v21 }
 0x3c9   : > { %1079 = vst.msk [vmem:[%s424_s7 + $0x4] sm:$0xf] %vm1069_vm3, %v1075_v24  ;;  %1078 = vst.msk [vmem:[%s424_s7] sm:$0xf] %vm1069_vm3, %v1074_v62  ;;  %v892_v6 = vpop.permute.xlu0 %891 }
 0x3ca   : > { %v900_v26 = vsel %vm696_vm2, %v876_v22, %v892_v6  ;;  %v890_v1 = vpop.permute.xlu1 %889 }
 0x3cb   : > { %v908_v27 = vmul.f32 %v900_v26, %v2434_v29  ;;  %v899_v30 = vsel %vm696_vm2, %v874_v23, %v890_v1 }
 0x3cc   : > { %v907_v28 = vmul.f32 %v899_v30, %v2434_v29 }
 0x3cd   : > { %v912_v32 = vadd.f32 %v908_v27, %v904_v7 }
 0x3ce   : > { %v911_v33 = vadd.f32 %v907_v28, %v903_v31 }
 0x3cf   : > { %v1077_v25 = vpack.c.bf16 %v912_v32, %v912_v32 }
 0x3d0   : > { %v1076_v35 = vpack.c.bf16 %v911_v33, %v911_v33 }
 0x3d1   : > { %1081 = vst.msk [vmem:[%s424_s7 + $0xc] sm:$0xf] %vm1069_vm3, %v1077_v25 }
 0x3d2   : > { %1080 = vst.msk [vmem:[%s424_s7 + $0x8] sm:$0xf] %vm1069_vm3, %v1076_v35 }
 0x3d3   : > { %1766 = shalt.err (!%p1763_p1)
}
 0x3d4   : > { %s1767_s12 = scalar_lea.hbm %s2544_s23, 256  ;;  %s1771_s7 = scalar_lea.hbm %s2730_s1, 1024 }
 0x3d5   : > { %p1768_p13 = scmp.ne.s32.totalorder %s2544_s23, %s1767_s12  ;;  %p1772_p9 = scmp.lt.u32.totalorder %s2544_s23, %s2730_s1 }
 0x3d6   : > { %p1773_p0 = scmp.lt.u32.totalorder %s1771_s7, %s1767_s12  ;;  %p1775_p7 = scmp.lt.u32.totalorder %s1767_s12, %s2544_s23 }
 0x3d7   : > { %p1769_p2 = pnand %p1768_p13, %p2729_p12 }
 0x3d8   : > { %p1774_p5 = por %p1773_p0, %p1772_p9 }
 0x3d9   : > { %p1770_p3 = pneg %p1769_p2 }
 0x3da   : > { %p1776_p8 = por %p1775_p7, %p1774_p5 }
 0x3dc   : > { %p1777_p11 = pnand %p1776_p8, %p1770_p3 }
 0x3de   : > { %1780 = shalt.err (!%p1777_p11)
}
 0x3df   : > { %s2732_s24 = smov 64   ;;  %s1781_s8 = scalar_lea.vmem %s2546_s20, 256 }
 0x3e0   : > { %1433 = dma.vmem_to_hbm [thread:$0]  (%p2729_p12), %s2538_s19, 256, %s2544_s23, %s2558_s3, %s2732_s24, %s1936_s15, %s1933_s14  }
 0x3e1   : > { %p1782_p6 = scmp.ne.s32.totalorder %s2546_s20, %s1781_s8  ;;  %s1938_s27 = smov [#allocation14]  }
 0x3e2   : > { %s1785_s21 = sshll.u32 %s1938_s27, 4  ;;  %s1786_s21 = int_to_ptr.vmem [resolvable:$false] %s1785_s21 }
 0x3e3   : > { %p1783_p10 = pnand %p1782_p6, %p2729_p12  ;;  %s1787_s12 = scalar_lea.vmem %s1786_s21, 512 }
 0x3e4   : > { %p1788_p1 = scmp.lt.s32.totalorder %s2546_s20, %s1786_s21  ;;  %p1789_p13 = scmp.lt.s32.totalorder %s1787_s12, %s1781_s8 }
 0x3e5   : > { %p1784_p4 = pneg %p1783_p10 }
 0x3e6   : > { %p1790_p2 = por %p1789_p13, %p1788_p1 }
 0x3e8   : > { %p1791_p3 = pnand %p1790_p2, %p1784_p4 }
 0x3ea   : > { %1794 = shalt.err (!%p1791_p3)
}
 0x3eb   : > { %s1795_s19 = scalar_lea.hbm %s2553_s30, 256  ;;  %s1799_s16 = scalar_lea.hbm %s2731_s5, 1024 }
 0x3ec   : > { %p1796_p9 = scmp.ne.s32.totalorder %s2553_s30, %s1795_s19  ;;  %p1800_p7 = scmp.lt.u32.totalorder %s2553_s30, %s2731_s5 }
 0x3ed   : > { %p1801_p8 = scmp.lt.u32.totalorder %s1799_s16, %s1795_s19  ;;  %p1803_p6 = scmp.lt.u32.totalorder %s1795_s19, %s2553_s30 }
 0x3ee   : > { %p1797_p0 = pnand %p1796_p9, %p2729_p12 }
 0x3ef   : > { %p1802_p11 = por %p1801_p8, %p1800_p7 }
 0x3f0   : > { %p1798_p5 = pneg %p1797_p0 }
 0x3f1   : > { %p1804_p10 = por %p1803_p6, %p1802_p11 }
 0x3f3   : > { %p1805_p4 = pnand %p1804_p10, %p1798_p5 }
 0x3f5   : > { %1808 = shalt.err (!%p1805_p4)
}
 0x3f6   : > { %1434 = dma.vmem_to_hbm [thread:$0]  (%p2729_p12), %s2546_s20, 256, %s2553_s30, %s2558_s3, %s2732_s24, %s1936_s15, %s1933_s14  }
 0x3f7 PF: > { %s2733_s17 = sld [smem:[#allocation21_spill]]  ;;  %p1470_p1 = scmp.ge.s32.totalorder %s1915_s11, 2 }
 0x3f8   : > { %p2734_p13 = scmp.ne.s32.totalorder %s2713_s6, 0 }
 0x3fa   : > { %p1456_p2 = pnand %p1470_p1, %p2734_p13 }
 0x3fd   : > { %s1164_s8 = sand.u32 1, %s2733_s17  }
 0x3fe   : > { %s1165_s27 = scalar_lea.sflag [#allocation4], %s1164_s8 }
 0x3ff   : > { %1866 = dma.done.wait (!%p1456_p2), %s1165_s27, 256  }
 0x400   : > { %1868 = vsyncadd (!%p1456_p2), %s1165_s27, 4294967040  ;;  %s2735_s18 = sadd.s32 4294967294, %s1915_s11  }
 0x401   : > { %s1173_s21 = sand.u32 1, %s2735_s18  }
 0x402   : > { %s1174_s12 = scalar_lea.sflag [#allocation13], %s1173_s21 }
 0x403   : > { %1870 = dma.done.wait (!%p1456_p2), %s1174_s12, 512  }
 0x404   : > { %1872 = vsyncadd (!%p1456_p2), %s1174_s12, 4294966784  ;;  %s31_s11 = sadd.s32 1, %s1915_s11   ;;  %s2736_s14 = sld [smem:[#allocation20_spill]] }
 0x405   : > { %p28_p12 = scmp.ge.s32.totalorder %s31_s11, 6   ;;  %s2737_s15 = sld [smem:[#allocation25_spill]] }
 0x406   : > { %s2738_s20 = smov %s2221_s26  ;;  %s2739_s6 = sld [smem:[#allocation24_spill]] }
 0x407   : > { %s2740_s3 = sld [smem:[#allocation26_spill]]  ;;  %s2741_s24 = smov %s1879_s25 }
 0x408   : > { %s2744_s27 = smov %s1891_s28  ;;  %s2745_s28 = smov %s1895_s29 }
 0x409   : > { %s2746_s29 = smov %s2738_s20  ;;  %s2747_s30 = smov %s1907_s9 }
 0x40a   : > { %s2742_s25 = smov %s2736_s14  ;;  %s2748_s8 = smov %s1911_s10 }
 0x40b   : > { %s2743_s26 = smov %s2737_s15  ;;  %30 = sbr.rel (!%p28_p12) target bundleno = 21 (0x15), region = 149 }
 0x40c   : > { %s2749_s9 = smov %s2739_s6 }
 0x40d   : > { %s2750_s10 = smov %s2740_s3 }
 0x412   :  { %1188 = vsyncpa [#allocation3], 1 }
 0x413   :  { %1190 = vsyncpa [#allocation3 + $0x1], 1 }
 0x414   :  { %1191 = vsyncpa [#allocation6], 1 }
 0x415   :  { %1193 = vsyncpa [#allocation6 + $0x1], 1 }
 0x416   :  { %1194 = vsyncpa [#allocation9], 1 }
 0x417   :  { %1195 = vsyncpa [#allocation4], 1 }
 0x418   :  { %1197 = vsyncpa [#allocation4 + $0x1], 1 }
 0x419   :  { %1198 = vsyncpa [#allocation13], 1 }
 0x41a   :  { %1200 = vsyncpa [#allocation13 + $0x1], 1 }

</bundles_post_ra>
